<compile_context>
chip_gen: v7x
topology: tpu7x:2x2x1
jax: 0.10.0
libtpu: 0.0.40
codegen_flags: <defaults>
</compile_context>

<pallas_src>
import functools

import jax
import jax.numpy as jnp
from jax.experimental import pallas as pl
from jax.experimental.pallas import tpu as pltpu


def simple_nn_kernel(x_ref, p_ref, o_ref, *, in_size):
    """One batch tile.

    x_ref: (in_size, TILE_B)  f32   -- batch on lanes
    p_ref: (P_ROWS, 128)      f32   -- packed params:
             cols [0:in_size]          = w1   (hidden rows x input cols)
             col  in_size               = b1
             col  in_size + 1           = w2   (hidden values down sublanes)
             col  in_size + 2, row 0    = b2
    o_ref: (1, TILE_B)        f32
    """
    p = p_ref[...]                       # (P_ROWS, 128)
    x = x_ref[...]                       # (in_size, TILE_B)

    # Layer 1: broadcast FMAs on the VPU.  h[h_idx, b] = sum_i w1[h,i]*x[i,b] + b1[h]
    h = p[:, in_size:in_size + 1]        # b1 column, (P_ROWS, 1)
    for i in range(in_size):             # static unroll, in_size is tiny (2)
        h = h + p[:, i:i + 1] * x[i:i + 1, :]
    h = jnp.maximum(h, 0.0)              # ReLU, (P_ROWS, TILE_B)

    # Layer 2: weighted cross-sublane reduction (XLU).  Padded rows have w2 == 0.
    w2 = p[:, in_size + 1:in_size + 2]   # (P_ROWS, 1)
    b2 = p[0:1, in_size + 2:in_size + 3]  # (1, 1)
    y = jnp.sum(h * w2, axis=0, keepdims=True) + b2   # (1, TILE_B)

    o_ref[...] = y.astype(o_ref.dtype)


def simple_nn_forward(x, w1, b1, w2, b2, *, tile_b=512):
    """Forward pass of SimpleNN.

    Args:
      x:  (B, input_size)   float32
      w1: (hidden, input)   float32  (PyTorch nn.Linear layout)
      b1: (hidden,)         float32
      w2: (1, hidden)       float32  (PyTorch nn.Linear layout)
      b2: (1,)              float32
    Returns:
      (B, 1) float32
    """
    B, in_size = x.shape
    hidden = w1.shape[0]

    # --- Lane-dense batch tiling -------------------------------------------
    # Keep the tile a multiple of 128 lanes; shrink it for small batches to
    # avoid gratuitous padding, cap it at `tile_b` for large batches.
    tile_b = max(128, min(tile_b, 128 * pl.cdiv(B, 128)))
    grid_b = pl.cdiv(B, tile_b)
    b_pad = grid_b * tile_b

    # x transposed to (features, batch), batch padded on the lane axis.
    x_t = jnp.zeros((in_size, b_pad), jnp.float32).at[:, :B].set(x.T)

    # --- Pack all parameters into one (P_ROWS, 128) f32 tile (single DMA) ---
    p_rows = 8 * pl.cdiv(hidden, 8)
    params = jnp.zeros((p_rows, 128), jnp.float32)
    params = params.at[:hidden, 0:in_size].set(w1)          # w1
    params = params.at[:hidden, in_size].set(b1)            # b1
    params = params.at[:hidden, in_size + 1].set(w2[0])     # w2
    params = params.at[0, in_size + 2].set(b2[0])           # b2

    out_pad = pl.pallas_call(
        functools.partial(simple_nn_kernel, in_size=in_size),
        out_shape=jax.ShapeDtypeStruct((1, b_pad), jnp.float32),
        grid=(grid_b,),
        in_specs=[
            # x: full feature dim (== array dim), lane-tiled batch.
            pl.BlockSpec((in_size, tile_b), lambda i: (0, i)),
            # params: one resident tile for the whole grid.
            pl.BlockSpec((p_rows, 128), lambda i: (0, 0)),
        ],
        out_specs=pl.BlockSpec((1, tile_b), lambda i: (0, i)),
        compiler_params=pltpu.CompilerParams(
            dimension_semantics=("parallel",)),
    )(x_t, params)

    # Strip batch padding and restore the (B, 1) PyTorch output layout.
    return out_pad[0, :B].reshape(B, 1)


if __name__ == "__main__":
    input_size = 2
    hidden_size = 8
    batch = 8

    key = jax.random.PRNGKey(0)
    kx, kw1, kb1, kw2, kb2 = jax.random.split(key, 5)

    # Deterministic synthetic parameters (PyTorch nn.Linear shapes).
    x = jax.random.normal(kx, (batch, input_size), dtype=jnp.float32)
    w1 = jax.random.normal(kw1, (hidden_size, input_size), dtype=jnp.float32) * 0.5
    b1 = jax.random.normal(kb1, (hidden_size,), dtype=jnp.float32) * 0.1
    w2 = jax.random.normal(kw2, (1, hidden_size), dtype=jnp.float32) * 0.5
    b2 = jax.random.normal(kb2, (1,), dtype=jnp.float32) * 0.1

    out = simple_nn_forward(x, w1, b1, w2, b2)
    jax.block_until_ready(out)

    # Reference check in plain JAX (same math as the PyTorch forward).
    ref = jnp.maximum(x @ w1.T + b1, 0.0) @ w2.T + b2
    assert out.shape == (batch, 1)
    assert jnp.allclose(out, ref, atol=1e-5), "mismatch vs reference"

    # Also check a larger, non-tile-multiple batch to exercise the grid path.
    big_b = 1000
    xb = jax.random.normal(jax.random.PRNGKey(1), (big_b, input_size), jnp.float32)
    out_b = simple_nn_forward(xb, w1, b1, w2, b2)
    jax.block_until_ready(out_b)
    ref_b = jnp.maximum(xb @ w1.T + b1, 0.0) @ w2.T + b2
    assert out_b.shape == (big_b, 1)
    assert jnp.allclose(out_b, ref_b, atol=1e-5), "mismatch vs reference (large batch)"

    print("KERNEL_OK")
</pallas_src>

<mosaic_0001>
module attributes {stable_mosaic.version = 11 : i64} {
  func.func @simple_nn_kernel(%arg0: i32, %arg1: memref<2x128xf32, #tpu.memory_space<vmem>>, %arg2: memref<8x128xf32, #tpu.memory_space<vmem>>, %arg3: memref<1x128xf32, #tpu.memory_space<vmem>>) attributes {dimension_semantics = [#tpu.dimension_semantics<parallel>], iteration_bounds = array<i64: 1>, scalar_prefetch = 0 : i64, scratch_operands = 0 : i64, tpu.core_type = #tpu.core_type<tc>, window_params = [{transform_indices = @transform_0, window_bounds = array<i64: 2, 128>}, {pipeline_mode = #tpu.pipeline_mode<synchronous>, transform_indices = @transform_1, window_bounds = array<i64: 8, 128>}, {transform_indices = @transform_2, window_bounds = array<i64: 1, 128>}]} {
    %c0 = arith.constant 0 : index
    %c0_0 = arith.constant 0 : index
    %0 = vector.load %arg2[%c0, %c0_0] : memref<8x128xf32, #tpu.memory_space<vmem>>, vector<8x128xf32>
    %c0_1 = arith.constant 0 : index
    %c0_2 = arith.constant 0 : index
    %1 = vector.load %arg1[%c0_1, %c0_2] : memref<2x128xf32, #tpu.memory_space<vmem>>, vector<2x128xf32>
    %2 = vector.extract_strided_slice %0 {offsets = [0, 2], sizes = [8, 1], strides = [1, 1]} : vector<8x128xf32> to vector<8x1xf32>
    %3 = vector.extract_strided_slice %0 {offsets = [0, 0], sizes = [8, 1], strides = [1, 1]} : vector<8x128xf32> to vector<8x1xf32>
    %4 = vector.extract_strided_slice %1 {offsets = [0, 0], sizes = [1, 128], strides = [1, 1]} : vector<2x128xf32> to vector<1x128xf32>
    %5 = vector.broadcast %3 : vector<8x1xf32> to vector<8x128xf32>
    %6 = vector.broadcast %4 : vector<1x128xf32> to vector<8x128xf32>
    %7 = arith.mulf %5, %6 : vector<8x128xf32>
    %8 = vector.broadcast %2 : vector<8x1xf32> to vector<8x128xf32>
    %9 = arith.addf %8, %7 : vector<8x128xf32>
    %10 = vector.extract_strided_slice %0 {offsets = [0, 1], sizes = [8, 1], strides = [1, 1]} : vector<8x128xf32> to vector<8x1xf32>
    %11 = vector.extract_strided_slice %1 {offsets = [1, 0], sizes = [1, 128], strides = [1, 1]} : vector<2x128xf32> to vector<1x128xf32>
    %12 = vector.broadcast %10 : vector<8x1xf32> to vector<8x128xf32>
    %13 = vector.broadcast %11 : vector<1x128xf32> to vector<8x128xf32>
    %14 = arith.mulf %12, %13 : vector<8x128xf32>
    %15 = arith.addf %9, %14 : vector<8x128xf32>
    %cst = arith.constant 0.000000e+00 : f32
    %16 = vector.broadcast %cst : f32 to vector<8x128xf32>
    %17 = arith.maximumf %15, %16 : vector<8x128xf32>
    %18 = vector.extract_strided_slice %0 {offsets = [0, 3], sizes = [8, 1], strides = [1, 1]} : vector<8x128xf32> to vector<8x1xf32>
    %19 = vector.extract_strided_slice %0 {offsets = [0, 4], sizes = [1, 1], strides = [1, 1]} : vector<8x128xf32> to vector<1x1xf32>
    %20 = vector.broadcast %18 : vector<8x1xf32> to vector<8x128xf32>
    %21 = arith.mulf %17, %20 : vector<8x128xf32>
    %cst_3 = arith.constant dense<0.000000e+00> : vector<128xf32>
    %22 = vector.multi_reduction <add>, %21, %cst_3 [0] : vector<8x128xf32> to vector<128xf32>
    %23 = vector.shape_cast %22 : vector<128xf32> to vector<1x128xf32>
    %24 = vector.broadcast %19 : vector<1x1xf32> to vector<1x128xf32>
    %25 = arith.addf %23, %24 : vector<1x128xf32>
    %c0_4 = arith.constant 0 : index
    %c0_5 = arith.constant 0 : index
    %26 = vector.load %arg3[%c0_4, %c0_5] : memref<1x128xf32, #tpu.memory_space<vmem>>, vector<1x128xf32>
    tpu.vector_store %arg3[%c0_4, %c0_5], %25 {strides = array<i32>} : memref<1x128xf32, #tpu.memory_space<vmem>>, vector<1x128xf32>,
    return
  }
  func.func @transform_0(%arg0: i32) -> (i32, i32) {
    %c0_i32 = arith.constant 0 : i32
    %c0_i32_0 = arith.constant 0 : i32
    return %c0_i32, %arg0 : i32, i32
  }
  func.func @transform_1(%arg0: i32) -> (i32, i32) {
    %c0_i32 = arith.constant 0 : i32
    %c0_i32_0 = arith.constant 0 : i32
    %c0_i32_1 = arith.constant 0 : i32
    return %c0_i32, %c0_i32_0 : i32, i32
  }
  func.func @transform_2(%arg0: i32) -> (i32, i32) {
    %c0_i32 = arith.constant 0 : i32
    %c0_i32_0 = arith.constant 0 : i32
    return %c0_i32, %arg0 : i32, i32
  }
}

</mosaic_0001>

<bundles_post_ra>
// kernel: tpu_custom_call.1
= control target key start
LH: loop header
LB: loop body
LE: loop exit
PB: predicated region body
PF: predicated region fallthrough
CT: control target
= control target key end

     0   :  { %7 = vsyncpa [#allocation3], 0  ;;  %s242_s0 = inlined_call_operand.hbm [shape: f32[2,128], index: 0, kind: input, shape index: {}]   ;;  %s243_s1 = inlined_call_operand.hbm [shape: f32[8,128], index: 1, kind: input, shape index: {}]   ;;  %s244_s2 = inlined_call_operand.hbm [shape: f32[1,128], index: 2, kind: output, shape index: {}]  }
   0x1   :  { %8 = vsyncpa [#allocation6], 0 }
   0x2   :  { %9 = vsyncpa [#allocation4], 0  ;;  %s183_s9 = smov [#allocation2]   ;;  %s184_s11 = smov [#allocation5]  }
   0x3   :  { %s16_s10 = sshll.u32 %s183_s9, 4  ;;  %s26_s12 = sshll.u32 %s184_s11, 4  ;;  %s17_s10 = int_to_ptr.vmem [resolvable:$true] %s16_s10  ;;  %s27_s12 = int_to_ptr.vmem [resolvable:$true] %s26_s12 }
   0x4   :  { %s111_s15 = scalar_lea.hbm %s242_s0, 32 }
   0x5   :  { %p112_p0 = scmp.ne.s32.totalorder %s242_s0, %s111_s15  ;;  %p115_p1 = scmp.lt.u32.totalorder %s111_s15, %s242_s0 }
   0x7   :  { %p117_p2 = pnand %p115_p1, %p112_p0 }
   0x9   :  { %120 = shalt.err (!%p117_p2)
}
   0xa   :  { %s121_s20 = scalar_lea.vmem %s17_s10, 32  ;;  %p126_p4 = scmp.lt.s32.totalorder %s17_s10, %s17_s10 }
   0xb   :  { %p122_p3 = scmp.ne.s32.totalorder %s17_s10, %s121_s20  ;;  %p127_p5 = scmp.lt.s32.totalorder %s121_s20, %s121_s20 }
   0xd   :  { %p128_p6 = por %p127_p5, %p126_p4 }
   0xf   :  { %p129_p7 = pnand %p128_p6, %p122_p3 }
  0x11   :  { %132 = shalt.err (!%p129_p7)
}
  0x12   :  { %19 = dma.hbm_to_vmem [thread:$0]  %s242_s0, 32, %s17_s10, [#allocation3]  }
  0x13   :  { %s133_s25 = scalar_lea.hbm %s243_s1, 128 }
  0x14   :  { %p134_p8 = scmp.ne.s32.totalorder %s243_s1, %s133_s25  ;;  %p137_p9 = scmp.lt.u32.totalorder %s133_s25, %s243_s1 }
  0x16   :  { %p139_p10 = pnand %p137_p9, %p134_p8 }
  0x18   :  { %142 = shalt.err (!%p139_p10)
}
  0x19   :  { %s143_s30 = scalar_lea.vmem %s27_s12, 128  ;;  %p148_p12 = scmp.lt.s32.totalorder %s27_s12, %s27_s12 }
  0x1a   :  { %p144_p11 = scmp.ne.s32.totalorder %s27_s12, %s143_s30  ;;  %p149_p13 = scmp.lt.s32.totalorder %s143_s30, %s143_s30 }
  0x1c   :  { %p150_p0 = por %p149_p13, %p148_p12 }
  0x1e   :  { %p151_p1 = pnand %p150_p0, %p144_p11 }
  0x20   :  { %154 = shalt.err (!%p151_p1)
}
  0x21   :  { %29 = dma.hbm_to_vmem [thread:$0]  %s243_s1, 128, %s27_s12, [#allocation6]  }
  0x22   :  { %177 = dma.done.wait [#allocation3], 32  }
  0x23   :  { %178 = vsyncadd [#allocation3], 4294967264 }
  0x24   :  { %179 = dma.done.wait [#allocation6], 128  }
  0x25   :  { %180 = vsyncadd [#allocation6], 4294967168  ;;  %v185_v0 = vmov 0   ;;  %v186_v1 = vmov 1   ;;  %v36_v2 = vld [vmem:[#allocation5] sm:$0xff]  ;;  %v187_v3 = vmov 2   ;;  %v43_v6 = vlaneseq }
  0x26   :  { %105 = vset.pattern.permute.xlu0 %v185_v0  ;;  %107 = vset.pattern.permute.xlu1 %v186_v1  ;;  %v188_v4 = vmov 3   ;;  %v189_v5 = vmov 4   ;;  %v37_v10 = vld [vmem:[#allocation2] sm:$0x3]  ;;  %s190_s1 = smov [#allocation7]  }
  0x27   :  { %40 = vperm.xlu0 %105, %v36_v2   ;;  %54 = vperm.xlu1 %107, %v36_v2   ;;  %v44_v7 = vshrl.u32 %v43_v6, 7  ;;  %s87_s4 = sshll.u32 %s190_s1, 4  ;;  %s88_s4 = int_to_ptr.vmem [resolvable:$true] %s87_s4 }
  0x28   :  { %s155_s5 = scalar_lea.vmem %s88_s4, 16  ;;  %s159_s6 = scalar_lea.vmem %s88_s4, 32 }
  0x29   :  { %v45_v8 = vsub.s32 0, %v44_v7  ;;  %v59_v9 = vsub.s32 1, %v44_v7  ;;  %p156_p2 = scmp.ne.s32.totalorder %s88_s4, %s155_s5  ;;  %p160_p3 = scmp.lt.s32.totalorder %s88_s4, %s88_s4 }
  0x2a   :  { %p161_p4 = scmp.lt.s32.totalorder %s159_s6, %s155_s5 }
  0x2b   :  { %106 = vset.pattern.permute.xlu0 %v187_v3  ;;  %108 = vset.pattern.permute.xlu1 %v188_v4  ;;  %v46_v11 = vrot.slane %v37_v10, %v45_v8  ;;  %v60_v13 = vrot.slane %v37_v10, %v59_v9 }
  0x2c   :  { %49 = vperm.xlu0 %106, %v36_v2   ;;  %65 = vperm.xlu1 %108, %v36_v2   ;;  %p162_p5 = por %p161_p4, %p160_p3 }
  0x2e   :  { %p163_p6 = pnand %p162_p5, %p156_p2 }
  0x30   :  { %109 = vset.pattern.permute.xlu1 %v189_v5  ;;  %110 = vset.pattern.permute.xlu0 %v189_v5 }
  0x31   :  { %76 = vperm.xlu1 %109, %v36_v2  }
  0xa6   :  { %v41_v12 = vpop.permute.xlu0 %40  ;;  %v55_v14 = vpop.permute.xlu1 %54 }
  0xa7   :  { %v47_v15 = vmul.f32 %v46_v11, %v41_v12  ;;  %v61_v16 = vmul.f32 %v60_v13, %v55_v14 }
  0xab   :  { %v50_v17 = vpop.permute.xlu0 %49  ;;  %v66_v20 = vpop.permute.xlu1 %65 }
  0xac   :  { %v52_v18 = vadd.f32 %v50_v17, %v47_v15 }
  0xae   :  { %v62_v19 = vadd.f32 %v61_v16, %v52_v18 }
  0xb0   :  { %v63_v21 = vmax.f32 %v62_v19, 0.0  ;;  %v77_v28 = vpop.permute.xlu1 %76 }
  0xb2   :  { %v68_v22 = vmul.f32 %v66_v20, %v63_v21 }
  0xb4   :  { %v69_v23 = vrot.slane %v68_v22, 4 }
  0xb6   :  { %v70_v24 = vadd.f32 %v69_v23, %v68_v22 }
  0xb8   :  { %v71_v25 = vrot.slane %v70_v24, 2 }
  0xba   :  { %v72_v26 = vadd.f32 %v71_v25, %v70_v24 }
  0xbc   :  { %v73_v27 = vrot.slane %v72_v26, 1 }
  0xbe   :  { %v74_v29 = vadd.f32 %v73_v27, %v72_v26 }
  0xc0   :  { %v79_v30 = vadd.f32 %v77_v28, %v74_v29 }
  0xc2   :  { %80 = vst [vmem:[#allocation7] sm:$0x1] %v79_v30 }
  0xc3   :  { %166 = shalt.err (!%p163_p6)
}
  0xc4   :  { %s167_s9 = scalar_lea.hbm %s244_s2, 16 }
  0xc5   :  { %p168_p7 = scmp.ne.s32.totalorder %s244_s2, %s167_s9  ;;  %p171_p8 = scmp.lt.u32.totalorder %s167_s9, %s244_s2 }
  0xc7   :  { %p173_p9 = pnand %p171_p8, %p168_p7 }
  0xc9   :  { %176 = shalt.err (!%p173_p9)
}
  0xca   :  { %90 = dma.vmem_to_hbm [thread:$0]  %s88_s4, 16, %s244_s2, [#allocation4]  }
  0xcb   :  { %181 = dma.done.wait [#allocation4], 16  }
  0xcc   :  { %182 = vsyncadd [#allocation4], 4294967280 }
  0xcd   :  { %94 = vsyncpa [#allocation3], 1 }
  0xce   :  { %95 = vsyncpa [#allocation6], 1 }
  0xcf   :  { %96 = vsyncpa [#allocation4], 1 }

</bundles_post_ra>
